<compile_context>
chip_gen: v6e
topology: v6e:2x2x1
jax: 0.10.0
libtpu: 0.0.40
codegen_flags: <defaults>
</compile_context>

<pallas_src>
import jax
import jax.numpy as jnp
from jax import lax
from jax.experimental import pallas as pl
from jax.experimental.pallas import tpu as pltpu


def _linear_permute_linear_kernel(x_ref, w_ref, b_ref, o_ref):
    # x_ref: (1, S, D) block (one batch element)
    # w_ref: (D, D) nn.Linear weight (out_features, in_features), VMEM-resident
    # b_ref: (1, D) bias row, VMEM-resident
    # o_ref: (1, D, S) output block (here S == D)
    x = x_ref[0]          # (S, D)
    w = w_ref[...]        # (D, D)
    bias = b_ref[...]     # (1, D) -> broadcasts over rows

    # v1[s, j] = sum_k x[s, k] * w[j, k] + b[j]   ==  x @ W.T + b
    # (transpose of W folded into the contraction, no jnp.transpose)
    v1 = lax.dot_general(
        x, w, (((1,), (1,)), ((), ())),
        preferred_element_type=jnp.float32,
    ) + bias                                              # (S, D)

    # out[j, m] = sum_s v1[s, j] * w[m, s] + b[m]  ==  (v1.T) @ W.T + b
    # (the permute(0, 2, 1) is folded into the contraction dims)
    out = lax.dot_general(
        v1, w, (((0,), (1,)), ((), ())),
        preferred_element_type=jnp.float32,
    ) + bias                                              # (D, S) since S == D

    o_ref[0] = out.astype(o_ref.dtype)


@jax.jit
def linear_permute_linear(x, w, b):
    B, S, D = x.shape
    # Second linear contracts the permuted axis (length S) against W's input
    # dim (D); the model is only well-defined when S == D.
    assert S == D, "linear->permute->linear requires S == D"
    assert w.shape == (D, D)
    b2 = b.reshape(1, D)

    return pl.pallas_call(
        _linear_permute_linear_kernel,
        out_shape=jax.ShapeDtypeStruct((B, D, S), jnp.float32),
        grid_spec=pltpu.PrefetchScalarGridSpec(
            num_scalar_prefetch=0,
            grid=(B,),
            in_specs=[
                # per-batch x tile, pipelined over the grid
                pl.BlockSpec((1, S, D), lambda bi: (bi, 0, 0)),
                # W and bias: constant block index -> stay resident in VMEM
                pl.BlockSpec((D, D), lambda bi: (0, 0)),
                pl.BlockSpec((1, D), lambda bi: (0, 0)),
            ],
            out_specs=pl.BlockSpec((1, D, S), lambda bi: (bi, 0, 0)),
        ),
        compiler_params=pltpu.CompilerParams(
            dimension_semantics=("parallel",),
        ),
    )(x, w, b2)


if __name__ == "__main__":
    key = jax.random.PRNGKey(0)
    kx, kw, kb, kx2 = jax.random.split(key, 4)

    # Shapes implied by the original module: x1 = torch.randn(1, 4, 4), Linear(4, 4)
    B, S, D = 1, 4, 4
    x1 = jax.random.normal(kx, (B, S, D), dtype=jnp.float32)
    # Deterministic init mimicking nn.Linear(4, 4): uniform(-1/sqrt(4), 1/sqrt(4))
    bound = 1.0 / (D ** 0.5)
    W = jax.random.uniform(kw, (D, D), minval=-bound, maxval=bound, dtype=jnp.float32)
    b = jax.random.uniform(kb, (D,), minval=-bound, maxval=bound, dtype=jnp.float32)

    def ref_fn(x):
        v1 = x @ W.T + b
        v2 = jnp.transpose(v1, (0, 2, 1))
        return v2 @ W.T + b

    out = jax.block_until_ready(linear_permute_linear(x1, W, b))
    ref = ref_fn(x1)
    assert out.shape == ref.shape == (B, D, S)
    assert jnp.allclose(out, ref, atol=1e-5, rtol=1e-5)

    # Also exercise the batched / gridded path (grid over the batch axis).
    xb = jax.random.normal(kx2, (8, S, D), dtype=jnp.float32)
    outb = jax.block_until_ready(linear_permute_linear(xb, W, b))
    assert jnp.allclose(outb, ref_fn(xb), atol=1e-5, rtol=1e-5)

    print("KERNEL_OK")
</pallas_src>

<mosaic_0001>
module attributes {stable_mosaic.version = 11 : i64} {
  func.func @_linear_permute_linear_kernel(%arg0: i32, %arg1: memref<1x4x4xf32, #tpu.memory_space<vmem>>, %arg2: memref<4x4xf32, #tpu.memory_space<vmem>>, %arg3: memref<1x4xf32, #tpu.memory_space<vmem>>, %arg4: memref<1x4x4xf32, #tpu.memory_space<vmem>>) attributes {dimension_semantics = [#tpu.dimension_semantics<parallel>], iteration_bounds = array<i64: 1>, scalar_prefetch = 0 : i64, scratch_operands = 0 : i64, tpu.core_type = #tpu.core_type<tc>, window_params = [{transform_indices = @transform_0, window_bounds = array<i64: 1, 4, 4>}, {pipeline_mode = #tpu.pipeline_mode<synchronous>, transform_indices = @transform_1, window_bounds = array<i64: 4, 4>}, {pipeline_mode = #tpu.pipeline_mode<synchronous>, transform_indices = @transform_2, window_bounds = array<i64: 1, 4>}, {transform_indices = @transform_3, window_bounds = array<i64: 1, 4, 4>}]} {
    %c0 = arith.constant 0 : index
    %c0_0 = arith.constant 0 : index
    %c0_1 = arith.constant 0 : index
    %0 = vector.load %arg1[%c0, %c0_0, %c0_1] : memref<1x4x4xf32, #tpu.memory_space<vmem>>, vector<1x4x4xf32>
    %1 = vector.shape_cast %0 : vector<1x4x4xf32> to vector<4x4xf32>
    %c0_2 = arith.constant 0 : index
    %c0_3 = arith.constant 0 : index
    %2 = vector.load %arg2[%c0_2, %c0_3] : memref<4x4xf32, #tpu.memory_space<vmem>>, vector<4x4xf32>
    %c0_4 = arith.constant 0 : index
    %c0_5 = arith.constant 0 : index
    %3 = vector.load %arg3[%c0_4, %c0_5] : memref<1x4xf32, #tpu.memory_space<vmem>>, vector<1x4xf32>
    %cst = arith.constant dense<0.000000e+00> : vector<4x4xf32>
    %4 = tpu.matmul %1, %2, %cst {dimension_numbers = #tpu.dot_dimension_numbers<[1], [1], [0], [0], [0, 0, 1, 0], [], []>} : vector<4x4xf32>, vector<4x4xf32>, vector<4x4xf32> -> vector<4x4xf32>
    %5 = vector.broadcast %3 : vector<1x4xf32> to vector<4x4xf32>
    %6 = arith.addf %4, %5 : vector<4x4xf32>
    %cst_6 = arith.constant dense<0.000000e+00> : vector<4x4xf32>
    %7 = tpu.matmul %6, %2, %cst_6 {dimension_numbers = #tpu.dot_dimension_numbers<[0], [1], [1], [0], [0, 1, 1, 0], [], []>} : vector<4x4xf32>, vector<4x4xf32>, vector<4x4xf32> -> vector<4x4xf32>
    %8 = vector.broadcast %3 : vector<1x4xf32> to vector<4x4xf32>
    %9 = arith.addf %7, %8 : vector<4x4xf32>
    %c0_7 = arith.constant 0 : index
    %c0_8 = arith.constant 0 : index
    %c0_9 = arith.constant 0 : index
    %10 = vector.load %arg4[%c0_7, %c0_8, %c0_9] : memref<1x4x4xf32, #tpu.memory_space<vmem>>, vector<1x4x4xf32>
    %11 = vector.shape_cast %10 : vector<1x4x4xf32> to vector<4x4xf32>
    %12 = vector.shape_cast %9 : vector<4x4xf32> to vector<1x4x4xf32>
    tpu.vector_store %arg4[%c0_7, %c0_8, %c0_9], %12 {strides = array<i32>} : memref<1x4x4xf32, #tpu.memory_space<vmem>>, vector<1x4x4xf32>,
    return
  }
  func.func @transform_0(%arg0: i32) -> (i32, i32, i32) {
    %c0_i32 = arith.constant 0 : i32
    %c0_i32_0 = arith.constant 0 : i32
    %c0_i32_1 = arith.constant 0 : i32
    return %arg0, %c0_i32, %c0_i32_0 : i32, i32, i32
  }
  func.func @transform_1(%arg0: i32) -> (i32, i32) {
    %c0_i32 = arith.constant 0 : i32
    %c0_i32_0 = arith.constant 0 : i32
    %c0_i32_1 = arith.constant 0 : i32
    return %c0_i32, %c0_i32_0 : i32, i32
  }
  func.func @transform_2(%arg0: i32) -> (i32, i32) {
    %c0_i32 = arith.constant 0 : i32
    %c0_i32_0 = arith.constant 0 : i32
    %c0_i32_1 = arith.constant 0 : i32
    return %c0_i32, %c0_i32_0 : i32, i32
  }
  func.func @transform_3(%arg0: i32) -> (i32, i32, i32) {
    %c0_i32 = arith.constant 0 : i32
    %c0_i32_0 = arith.constant 0 : i32
    %c0_i32_1 = arith.constant 0 : i32
    return %arg0, %c0_i32, %c0_i32_0 : i32, i32, i32
  }
}

</mosaic_0001>

<bundles_post_ra>
// kernel: linear_permute_linear.1
= control target key start
LH: loop header
LB: loop body
LE: loop exit
PB: predicated region body
PF: predicated region fallthrough
CT: control target
= control target key end

     0   :  { %8 = vsyncpa [#allocation3], 0  ;;  %s375_s0 = inlined_call_operand.hbm [shape: f32[1,4,4], index: 0, kind: input, shape index: {}]   ;;  %s376_s1 = inlined_call_operand.hbm [shape: f32[4,4], index: 1, kind: input, shape index: {}]   ;;  %s377_s2 = inlined_call_operand.vmem [shape: f32[1,4], index: 2, kind: input, shape index: {}]   ;;  %s378_s3 = inlined_call_operand.hbm [shape: f32[1,4,4], index: 3, kind: output, shape index: {}]  }
   0x1   :  { %9 = vsyncpa [#allocation6], 0 }
   0x2   :  { %10 = vsyncpa [#allocation4], 0  ;;  %s338_s12 = smov [#allocation2]   ;;  %s339_s14 = smov [#allocation5]  }
   0x3   :  { %s17_s13 = sshll.u32 %s338_s12, 4  ;;  %s27_s15 = sshll.u32 %s339_s14, 4  ;;  %s18_s13 = int_to_ptr.vmem [resolvable:$true] %s17_s13  ;;  %s28_s15 = int_to_ptr.vmem [resolvable:$true] %s27_s15 }
   0x4   :  { %s280_s16 = scalar_lea.vmem %s18_s13, 64  ;;  %p285_p1 = scmp.lt.s32.totalorder %s18_s13, %s18_s13 }
   0x5   :  { %p281_p0 = scmp.ne.s32.totalorder %s18_s13, %s280_s16  ;;  %p286_p2 = scmp.lt.s32.totalorder %s280_s16, %s280_s16 }
   0x7   :  { %p287_p3 = por %p286_p2, %p285_p1 }
   0x9   :  { %p288_p4 = pnand %p287_p3, %p281_p0 }
   0xb   :  { %291 = shalt.err (!%p288_p4)
}
   0xc   :  { %20 = dma.hbm_to_vmem [thread:$0]  %s375_s0, 64, %s18_s13, [#allocation3]  }
   0xd   :  { %s300_s19 = scalar_lea.vmem %s28_s15, 64  ;;  %p305_p6 = scmp.lt.s32.totalorder %s28_s15, %s28_s15 }
   0xe   :  { %p301_p5 = scmp.ne.s32.totalorder %s28_s15, %s300_s19  ;;  %p306_p7 = scmp.lt.s32.totalorder %s300_s19, %s300_s19 }
  0x10   :  { %p307_p8 = por %p306_p7, %p305_p6 }
  0x12   :  { %p308_p9 = pnand %p307_p8, %p301_p5 }
  0x14   :  { %311 = shalt.err (!%p308_p9)
}
  0x15   :  { %30 = dma.hbm_to_vmem [thread:$0]  %s376_s1, 64, %s28_s15, [#allocation6]  }
  0x16   :  { %332 = dma.done.wait [#allocation3], 64  }
  0x17   :  { %333 = vsyncadd [#allocation3], 4294967232 }
  0x18   :  { %334 = dma.done.wait [#allocation6], 64  }
  0x19   :  { %335 = vsyncadd [#allocation6], 4294967232  ;;  %v340_v0 = vmov 0.0   ;;  %vm341_vm0 = vmmov 0   ;;  %vm48_vm1 = vcmask 31744   ;;  %s342_s1 = smov [#allocation7]  }
  0x1a   :  { %257 = vmatprep.subr.mxu0 %v340_v0  ;;  %259 = vmatprep.mubr.msk.f32.mxu0 %vm341_vm0, %v340_v0  ;;  %v40_v1 = vld [vmem:[#allocation5] sm:$0xf]  ;;  %v39_v2 = vld [vmem:[#allocation2] sm:$0xf]  ;;  %s238_s23 = sshll.u32 %s342_s1, 4  ;;  %vm230_vm2 = vcmask 27648   ;;  %s239_s23 = int_to_ptr.vmem [resolvable:$true] %s238_s23 }
  0x1b   :  { %262 = vmatprep.subr.mxu1 %v340_v0  ;;  %264 = vmatprep.mubr.msk.f32.mxu1 %vm341_vm0, %v340_v0  ;;  %v248_v3 = vld [vmem:[%s377_s2] ss:$0 sm:$0xff]  ;;  %s312_s24 = scalar_lea.vmem %s239_s23, 64  ;;  %p317_p11 = scmp.lt.s32.totalorder %s239_s23, %s239_s23 }
  0x1c   :  { %258 = vmatpush3.xpose.msk.msra.mxu0 %vm48_vm1, %v40_v1  ;;  %263 = vmatpush3.xpose.msk.msra.mxu1 %vm48_vm1, %v40_v1  ;;  %p313_p10 = scmp.ne.s32.totalorder %s239_s23, %s312_s24  ;;  %p318_p12 = scmp.lt.s32.totalorder %s312_s24, %s312_s24 }
  0x1e   :  { %p319_p13 = por %p318_p12, %p317_p11 }
  0x1f   :  { %260 = vmatmul.mubr.msk.f32.vlgmr.msra.gmra.mxu0 %vm48_vm1, %v39_v2 }
  0x20   :  { %p320_p0 = pnand %p319_p13, %p313_p10 }
  0xdf   :  { %v121_v4 = vpop.f32.mrf.mxu0 }
  0xe0   :  { %v122_v5 = vadd.f32 %v248_v3, %v121_v4 }
  0xe1   :  { %v261_v6 = vpop.f32.mrf.mxu0 }
  0xe2   :  { %125 = vxpose.xlu0.b32.start.end [1/1] (short) (narrow) %v122_v5, 8 }
 0x15e   :  { %v141_v7 = vpop.trf.xlu0 }
 0x15f   :  { %265 = vmatmul.mubr.msk.f32.vlgmr.msra.gmra.mxu1 %vm48_vm1, %v141_v7 }
 0x21f   :  { %v226_v8 = vpop.f32.mrf.mxu1 }
 0x220   :  { %v227_v9 = vadd.f32 %v248_v3, %v226_v8 }
 0x221   :  { %v266_v10 = vpop.f32.mrf.mxu1 }
 0x222   :  { %231 = vst.msk [vmem:[#allocation7] sm:$0xf] %vm230_vm2, %v227_v9 }
 0x223   :  { %323 = shalt.err (!%p320_p0)
}
 0x224   :  { %241 = dma.vmem_to_hbm [thread:$0]  %s239_s23, 64, %s378_s3, [#allocation4]  }
 0x225   :  { %336 = dma.done.wait [#allocation4], 64  }
 0x226   :  { %337 = vsyncadd [#allocation4], 4294967232 }
 0x227   :  { %245 = vsyncpa [#allocation3], 1 }
 0x228   :  { %246 = vsyncpa [#allocation6], 1 }
 0x229   :  { %247 = vsyncpa [#allocation4], 1 }

</bundles_post_ra>
